<compile_context>
chip_gen: v6e
topology: v6e:2x2x1
jax: 0.10.0
libtpu: 0.0.40
codegen_flags: <defaults>
</compile_context>

<pallas_src>
import jax
import jax.numpy as jnp
from jax.experimental import pallas as pl
from jax.experimental.pallas import tpu as pltpu

INPUT_SIZE = 3
K_AUG = INPUT_SIZE + 1          # input rows + ones row (folded gate bias)
HIDDEN = 64
FC1 = 32
FC2 = 2
GATES = 3 * HIDDEN              # i | g | o (forget gate removed: c0 = 0 makes it dead)


def _sigmoid_via_tanh(x):
    # sigmoid(x) == 0.5 * tanh(0.5 * x) + 0.5 : one EUP push instead of exp + recip.
    return 0.5 * jnp.tanh(0.5 * x) + 0.5


def lstm_model_kernel(
    x_ref,      # (4, TB)        [x rows ; ones row], batch on lanes
    w_igo_ref,  # (192, 4)       [W_i; W_g; W_o | folded bias column]
    w1_ref,     # (32, 64)       fc1.weight
    b1_ref,     # (32, 1)
    w2_ref,     # (2, 32)        fc2.weight
    b2_ref,     # (2, 1)
    out_ref,    # (2, TB)
):
    # ---- single LSTM step with h0 = c0 = 0; bias rides in the K=4 contraction ----
    gates = jnp.dot(w_igo_ref[...], x_ref[...],
                    preferred_element_type=jnp.float32)               # (192, TB)

    i_g = _sigmoid_via_tanh(gates[0 * HIDDEN:1 * HIDDEN, :])
    g_g = jnp.tanh(gates[1 * HIDDEN:2 * HIDDEN, :])
    o_g = _sigmoid_via_tanh(gates[2 * HIDDEN:3 * HIDDEN, :])

    c1 = i_g * g_g                                                    # c0 = 0
    h1 = o_g * jnp.tanh(c1)                                           # (64, TB)

    # ---- fc1 + ReLU ----
    z1 = jnp.dot(w1_ref[...], h1, preferred_element_type=jnp.float32) + b1_ref[...]
    z1 = jnp.maximum(z1, 0.0)                                         # (32, TB)

    # ---- fc2 ----
    z2 = jnp.dot(w2_ref[...], z1, preferred_element_type=jnp.float32) + b2_ref[...]
    out_ref[...] = z2.astype(out_ref.dtype)                           # (2, TB)


def _select_igo(a):
    """Keep only the [input | cell(g) | output] gate rows of a (4H, ...) tensor."""
    return jnp.concatenate(
        [a[0 * HIDDEN:1 * HIDDEN],
         a[2 * HIDDEN:3 * HIDDEN],
         a[3 * HIDDEN:4 * HIDDEN]],
        axis=0,
    )


def _round_up(v, m):
    return ((v + m - 1) // m) * m


def lstm_model_forward(x, params, tb=4096):
    """x: (B, 3) float32 -> (B, 2) float32."""
    B = x.shape[0]
    (w_ih, w_hh, b_ih, b_hh, w1, b1, w2, b2) = params
    del w_hh  # dead: h0 = 0 makes the recurrent matmul identically zero

    # ---- host-side glue: gate pruning, bias fold into an extra weight column ----
    w_igo = _select_igo(w_ih)                               # (192, 3)
    b_igo = _select_igo(b_ih + b_hh)                        # (192,)
    w_igo_aug = jnp.concatenate([w_igo, b_igo[:, None]], axis=1)   # (192, 4)
    b1c = b1.reshape(FC1, 1)                                # (32, 1)
    b2c = b2.reshape(FC2, 1)                                # (2, 1)

    # ---- batch tiling over the lane axis ----
    if B <= 256:
        tb_eff = B                                          # single full-extent block
        b_pad = B
    else:
        tb_cap = max(128, (tb // 128) * 128)                # lane tiles: multiples of 128
        half = _round_up(pl.cdiv(B, 2), 128)                # >= 2 grid steps (v7x megacore)
        tb_eff = min(tb_cap, half)
        b_pad = _round_up(B, tb_eff)
    grid = (b_pad // tb_eff,)

    # One fused op: transpose + batch pad + ones row (bias lane).  Padded lane columns
    # compute finite garbage and are sliced off before the return.
    x_aug = jnp.pad(x.T, ((0, 1), (0, b_pad - B)), constant_values=1.0)   # (4, b_pad)

    in_specs = [
        pl.BlockSpec((K_AUG, tb_eff), lambda i: (0, i)),        # x tile (batch on lanes)
        pl.BlockSpec((GATES, K_AUG), lambda i: (0, 0)),         # resident weights
        pl.BlockSpec((FC1, HIDDEN), lambda i: (0, 0)),
        pl.BlockSpec((FC1, 1), lambda i: (0, 0)),
        pl.BlockSpec((FC2, FC1), lambda i: (0, 0)),
        pl.BlockSpec((FC2, 1), lambda i: (0, 0)),
    ]
    out_specs = pl.BlockSpec((FC2, tb_eff), lambda i: (0, i))

    weight_bytes = 4 * (GATES * K_AUG + FC1 * HIDDEN + FC1 + FC2 * FC1 + FC2)
    cost = pl.CostEstimate(
        flops=2 * (GATES * K_AUG + FC1 * HIDDEN + FC2 * FC1) * b_pad,
        transcendentals=4 * HIDDEN * b_pad,                 # i, g, o, tanh(c1)
        bytes_accessed=4 * (K_AUG + FC2) * b_pad + weight_bytes,
    )

    out_t = pl.pallas_call(
        lstm_model_kernel,
        out_shape=jax.ShapeDtypeStruct((FC2, b_pad), jnp.float32),
        grid=grid,
        in_specs=in_specs,
        out_specs=out_specs,
        compiler_params=pltpu.CompilerParams(
            dimension_semantics=("parallel",),   # shard batch tiles across TCs (v7x)
            vmem_limit_bytes=40 << 20,           # headroom for tb=4096, < v7x 64 MiB
        ),
        cost_estimate=cost,
    )(x_aug, w_igo_aug, w1, b1c, w2, b2c)

    return out_t[:, :B].T                                    # (B, 2)


def init_params(key):
    """Deterministic parameter init matching nn.LSTM / nn.Linear shapes."""
    ks = jax.random.split(key, 8)
    s_lstm = 1.0 / jnp.sqrt(jnp.float32(HIDDEN))
    w_ih = jax.random.uniform(ks[0], (4 * HIDDEN, INPUT_SIZE), jnp.float32, -s_lstm, s_lstm)
    w_hh = jax.random.uniform(ks[1], (4 * HIDDEN, HIDDEN), jnp.float32, -s_lstm, s_lstm)
    b_ih = jax.random.uniform(ks[2], (4 * HIDDEN,), jnp.float32, -s_lstm, s_lstm)
    b_hh = jax.random.uniform(ks[3], (4 * HIDDEN,), jnp.float32, -s_lstm, s_lstm)
    s1 = 1.0 / jnp.sqrt(jnp.float32(HIDDEN))
    w1 = jax.random.uniform(ks[4], (FC1, HIDDEN), jnp.float32, -s1, s1)
    b1 = jax.random.uniform(ks[5], (FC1,), jnp.float32, -s1, s1)
    s2 = 1.0 / jnp.sqrt(jnp.float32(FC1))
    w2 = jax.random.uniform(ks[6], (FC2, FC1), jnp.float32, -s2, s2)
    b2 = jax.random.uniform(ks[7], (FC2,), jnp.float32, -s2, s2)
    return (w_ih, w_hh, b_ih, b_hh, w1, b1, w2, b2)


def reference_forward(x, params):
    """Pure-JAX reference with full PyTorch LSTM-step semantics (h0 = c0 = 0)."""
    (w_ih, w_hh, b_ih, b_hh, w1, b1, w2, b2) = params
    B = x.shape[0]
    h0 = jnp.zeros((B, HIDDEN), jnp.float32)
    c0 = jnp.zeros((B, HIDDEN), jnp.float32)
    gates = x @ w_ih.T + h0 @ w_hh.T + b_ih + b_hh
    i_g = jax.nn.sigmoid(gates[:, 0 * HIDDEN:1 * HIDDEN])
    f_g = jax.nn.sigmoid(gates[:, 1 * HIDDEN:2 * HIDDEN])
    g_g = jnp.tanh(gates[:, 2 * HIDDEN:3 * HIDDEN])
    o_g = jax.nn.sigmoid(gates[:, 3 * HIDDEN:4 * HIDDEN])
    c1 = f_g * c0 + i_g * g_g
    h1 = o_g * jnp.tanh(c1)
    z1 = jnp.maximum(h1 @ w1.T + b1, 0.0)
    return z1 @ w2.T + b2


if __name__ == "__main__":
    key = jax.random.PRNGKey(0)
    k_x, k_x2, k_p = jax.random.split(key, 3)
    params = init_params(k_p)

    # Small batch: single full-extent block (grid of 1).
    B = 8
    x = jax.random.normal(k_x, (B, INPUT_SIZE), dtype=jnp.float32)
    out = jax.block_until_ready(lstm_model_forward(x, params))
    ref = reference_forward(x, params)
    assert out.shape == (B, FC2), out.shape
    assert jnp.allclose(out, ref, atol=1e-5, rtol=1e-5), jnp.max(jnp.abs(out - ref))

    # Larger (ragged) batch: exercises padding + the >=2-step batch-tiled parallel grid.
    B2 = 300
    x2 = jax.random.normal(k_x2, (B2, INPUT_SIZE), dtype=jnp.float32)
    out2 = jax.block_until_ready(lstm_model_forward(x2, params))
    ref2 = reference_forward(x2, params)
    assert out2.shape == (B2, FC2), out2.shape
    assert jnp.allclose(out2, ref2, atol=1e-5, rtol=1e-5), jnp.max(jnp.abs(out2 - ref2))

    print("KERNEL_OK")
</pallas_src>

<mosaic_0001>
module attributes {stable_mosaic.version = 11 : i64} {
  func.func @lstm_model_kernel(%arg0: i32, %arg1: memref<4x8xf32, #tpu.memory_space<vmem>>, %arg2: memref<192x4xf32, #tpu.memory_space<vmem>>, %arg3: memref<32x64xf32, #tpu.memory_space<vmem>>, %arg4: memref<32x1xf32, #tpu.memory_space<vmem>>, %arg5: memref<2x32xf32, #tpu.memory_space<vmem>>, %arg6: memref<2x1xf32, #tpu.memory_space<vmem>>, %arg7: memref<2x8xf32, #tpu.memory_space<vmem>>) attributes {dimension_semantics = [#tpu.dimension_semantics<parallel>], iteration_bounds = array<i64: 1>, scalar_prefetch = 0 : i64, scratch_operands = 0 : i64, tpu.core_type = #tpu.core_type<tc>, window_params = [{transform_indices = @transform_0, window_bounds = array<i64: 4, 8>}, {pipeline_mode = #tpu.pipeline_mode<synchronous>, transform_indices = @transform_1, window_bounds = array<i64: 192, 4>}, {pipeline_mode = #tpu.pipeline_mode<synchronous>, transform_indices = @transform_2, window_bounds = array<i64: 32, 64>}, {pipeline_mode = #tpu.pipeline_mode<synchronous>, transform_indices = @transform_3, window_bounds = array<i64: 32, 1>}, {pipeline_mode = #tpu.pipeline_mode<synchronous>, transform_indices = @transform_4, window_bounds = array<i64: 2, 32>}, {pipeline_mode = #tpu.pipeline_mode<synchronous>, transform_indices = @transform_5, window_bounds = array<i64: 2, 1>}, {transform_indices = @transform_6, window_bounds = array<i64: 2, 8>}]} {
    %c0 = arith.constant 0 : index
    %c0_0 = arith.constant 0 : index
    %0 = vector.load %arg2[%c0, %c0_0] : memref<192x4xf32, #tpu.memory_space<vmem>>, vector<192x4xf32>
    %c0_1 = arith.constant 0 : index
    %c0_2 = arith.constant 0 : index
    %1 = vector.load %arg1[%c0_1, %c0_2] : memref<4x8xf32, #tpu.memory_space<vmem>>, vector<4x8xf32>
    %cst = arith.constant dense<0.000000e+00> : vector<192x8xf32>
    %2 = tpu.matmul %0, %1, %cst {dimension_numbers = #tpu.dot_dimension_numbers<[1], [0], [0], [1], [0, 0, 1, 1], [], []>} : vector<192x4xf32>, vector<4x8xf32>, vector<192x8xf32> -> vector<192x8xf32>
    %3 = vector.extract_strided_slice %2 {offsets = [0, 0], sizes = [64, 8], strides = [1, 1]} : vector<192x8xf32> to vector<64x8xf32>
    %cst_3 = arith.constant 5.000000e-01 : f32
    %4 = vector.broadcast %cst_3 : f32 to vector<64x8xf32>
    %5 = arith.mulf %4, %3 : vector<64x8xf32>
    %6 = math.tanh %5 : vector<64x8xf32>
    %cst_4 = arith.constant 5.000000e-01 : f32
    %7 = vector.broadcast %cst_4 : f32 to vector<64x8xf32>
    %8 = arith.mulf %7, %6 : vector<64x8xf32>
    %cst_5 = arith.constant 5.000000e-01 : f32
    %9 = vector.broadcast %cst_5 : f32 to vector<64x8xf32>
    %10 = arith.addf %8, %9 : vector<64x8xf32>
    %11 = vector.extract_strided_slice %2 {offsets = [64, 0], sizes = [64, 8], strides = [1, 1]} : vector<192x8xf32> to vector<64x8xf32>
    %12 = math.tanh %11 : vector<64x8xf32>
    %13 = vector.extract_strided_slice %2 {offsets = [128, 0], sizes = [64, 8], strides = [1, 1]} : vector<192x8xf32> to vector<64x8xf32>
    %cst_6 = arith.constant 5.000000e-01 : f32
    %14 = vector.broadcast %cst_6 : f32 to vector<64x8xf32>
    %15 = arith.mulf %14, %13 : vector<64x8xf32>
    %16 = math.tanh %15 : vector<64x8xf32>
    %cst_7 = arith.constant 5.000000e-01 : f32
    %17 = vector.broadcast %cst_7 : f32 to vector<64x8xf32>
    %18 = arith.mulf %17, %16 : vector<64x8xf32>
    %cst_8 = arith.constant 5.000000e-01 : f32
    %19 = vector.broadcast %cst_8 : f32 to vector<64x8xf32>
    %20 = arith.addf %18, %19 : vector<64x8xf32>
    %21 = arith.mulf %10, %12 : vector<64x8xf32>
    %22 = math.tanh %21 : vector<64x8xf32>
    %23 = arith.mulf %20, %22 : vector<64x8xf32>
    %c0_9 = arith.constant 0 : index
    %c0_10 = arith.constant 0 : index
    %24 = vector.load %arg3[%c0_9, %c0_10] : memref<32x64xf32, #tpu.memory_space<vmem>>, vector<32x64xf32>
    %cst_11 = arith.constant dense<0.000000e+00> : vector<32x8xf32>
    %25 = tpu.matmul %24, %23, %cst_11 {dimension_numbers = #tpu.dot_dimension_numbers<[1], [0], [0], [1], [0, 0, 1, 1], [], []>} : vector<32x64xf32>, vector<64x8xf32>, vector<32x8xf32> -> vector<32x8xf32>
    %c0_12 = arith.constant 0 : index
    %c0_13 = arith.constant 0 : index
    %26 = vector.load %arg4[%c0_12, %c0_13] : memref<32x1xf32, #tpu.memory_space<vmem>>, vector<32x1xf32>
    %27 = vector.broadcast %26 : vector<32x1xf32> to vector<32x8xf32>
    %28 = arith.addf %25, %27 : vector<32x8xf32>
    %cst_14 = arith.constant 0.000000e+00 : f32
    %29 = vector.broadcast %cst_14 : f32 to vector<32x8xf32>
    %30 = arith.maximumf %28, %29 : vector<32x8xf32>
    %c0_15 = arith.constant 0 : index
    %c0_16 = arith.constant 0 : index
    %31 = vector.load %arg5[%c0_15, %c0_16] : memref<2x32xf32, #tpu.memory_space<vmem>>, vector<2x32xf32>
    %cst_17 = arith.constant dense<0.000000e+00> : vector<2x8xf32>
    %32 = tpu.matmul %31, %30, %cst_17 {dimension_numbers = #tpu.dot_dimension_numbers<[1], [0], [0], [1], [0, 0, 1, 1], [], []>} : vector<2x32xf32>, vector<32x8xf32>, vector<2x8xf32> -> vector<2x8xf32>
    %c0_18 = arith.constant 0 : index
    %c0_19 = arith.constant 0 : index
    %33 = vector.load %arg6[%c0_18, %c0_19] : memref<2x1xf32, #tpu.memory_space<vmem>>, vector<2x1xf32>
    %34 = vector.broadcast %33 : vector<2x1xf32> to vector<2x8xf32>
    %35 = arith.addf %32, %34 : vector<2x8xf32>
    %c0_20 = arith.constant 0 : index
    %c0_21 = arith.constant 0 : index
    %36 = vector.load %arg7[%c0_20, %c0_21] : memref<2x8xf32, #tpu.memory_space<vmem>>, vector<2x8xf32>
    tpu.vector_store %arg7[%c0_20, %c0_21], %35 {strides = array<i32>} : memref<2x8xf32, #tpu.memory_space<vmem>>, vector<2x8xf32>,
    return
  }
  func.func @transform_0(%arg0: i32) -> (i32, i32) {
    %c0_i32 = arith.constant 0 : i32
    %c0_i32_0 = arith.constant 0 : i32
    return %c0_i32, %arg0 : i32, i32
  }
  func.func @transform_1(%arg0: i32) -> (i32, i32) {
    %c0_i32 = arith.constant 0 : i32
    %c0_i32_0 = arith.constant 0 : i32
    %c0_i32_1 = arith.constant 0 : i32
    return %c0_i32, %c0_i32_0 : i32, i32
  }
  func.func @transform_2(%arg0: i32) -> (i32, i32) {
    %c0_i32 = arith.constant 0 : i32
    %c0_i32_0 = arith.constant 0 : i32
    %c0_i32_1 = arith.constant 0 : i32
    return %c0_i32, %c0_i32_0 : i32, i32
  }
  func.func @transform_3(%arg0: i32) -> (i32, i32) {
    %c0_i32 = arith.constant 0 : i32
    %c0_i32_0 = arith.constant 0 : i32
    %c0_i32_1 = arith.constant 0 : i32
    return %c0_i32, %c0_i32_0 : i32, i32
  }
  func.func @transform_4(%arg0: i32) -> (i32, i32) {
    %c0_i32 = arith.constant 0 : i32
    %c0_i32_0 = arith.constant 0 : i32
    %c0_i32_1 = arith.constant 0 : i32
    return %c0_i32, %c0_i32_0 : i32, i32
  }
  func.func @transform_5(%arg0: i32) -> (i32, i32) {
    %c0_i32 = arith.constant 0 : i32
    %c0_i32_0 = arith.constant 0 : i32
    %c0_i32_1 = arith.constant 0 : i32
    return %c0_i32, %c0_i32_0 : i32, i32
  }
  func.func @transform_6(%arg0: i32) -> (i32, i32) {
    %c0_i32 = arith.constant 0 : i32
    %c0_i32_0 = arith.constant 0 : i32
    return %c0_i32, %arg0 : i32, i32
  }
}

</mosaic_0001>

<bundles_post_ra>
// kernel: tpu_custom_call.1
= control target key start
LH: loop header
LB: loop body
LE: loop exit
PB: predicated region body
PF: predicated region fallthrough
CT: control target
= control target key end

     0   :  { %vm122_vm0 = vcmask 1043456   ;;  %vm49_vm1 = vcmask 31744   ;;  %s1049_s0 = inlined_call_operand.vmem [shape: f32[4,8], index: 0, kind: input, shape index: {}]   ;;  %s1050_s1 = inlined_call_operand.vmem [shape: f32[192,4], index: 1, kind: input, shape index: {}]   ;;  %s1051_s2 = inlined_call_operand.vmem [shape: f32[32,64], index: 2, kind: input, shape index: {}]   ;;  %s1052_s3 = inlined_call_operand.vmem [shape: f32[32,1], index: 3, kind: input, shape index: {}]   ;;  %s1053_s4 = inlined_call_operand.vmem [shape: f32[2,32], index: 4, kind: input, shape index: {}]   ;;  %s1054_s5 = inlined_call_operand.vmem [shape: f32[2,1], index: 5, kind: input, shape index: {}]   ;;  %s1055_s6 = inlined_call_operand.hbm [shape: f32[2,8], index: 6, kind: output, shape index: {}]  }
   0x1   :  { %v48_v0 = vld [vmem:[%s1049_s0] sm:$0xf]  ;;  %v25_v2 = vld [vmem:[%s1050_s1 + $0x8] sm:$0xff]  ;;  %v26_v3 = vld [vmem:[%s1050_s1 + $0x10] sm:$0xff] }
   0x2   :  { %v24_v1 = vld [vmem:[%s1050_s1] sm:$0xff]  ;;  %706 = vmatprep.subr.msk.mxu0 %vm122_vm0, %v48_v0  ;;  %777 = vmatprep.subr.msk.mxu1 %vm122_vm0, %v48_v0  ;;  %v27_v4 = vld [vmem:[%s1050_s1 + $0x18] sm:$0xff]  ;;  %v41_v7 = vld [vmem:[%s1050_s1 + $0x88] sm:$0xff] }
   0x3   :  { %708 = vmatprep.mubr.msk.f32.mxu0 %vm49_vm1, %v24_v1  ;;  %707 = vmatpush3.msk.msra.mxu0 %vm122_vm0, %v48_v0  ;;  %v40_v5 = vld [vmem:[%s1050_s1 + $0x80] sm:$0xff]  ;;  %v42_v8 = vld [vmem:[%s1050_s1 + $0x90] sm:$0xff]  ;;  %v43_v9 = vld [vmem:[%s1050_s1 + $0x98] sm:$0xff] }
   0x4   :  { %709 = vmatmul.mubr.msk.f32.vlgmr.msra.gmra.mxu0 %vm49_vm1, %v25_v2  ;;  %778 = vmatpush3.msk.msra.mxu1 %vm122_vm0, %v48_v0  ;;  %v28_v6 = vld [vmem:[%s1050_s1 + $0x20] sm:$0xff]  ;;  %v29_v10 = vld [vmem:[%s1050_s1 + $0x28] sm:$0xff] }
   0x5   :  { %711 = vmatprep.mubr.msk.f32.mxu0 %vm49_vm1, %v26_v3  ;;  %732 = vmatprep.mubr.msk.f32.mxu1 %vm49_vm1, %v40_v5  ;;  %v44_v11 = vld [vmem:[%s1050_s1 + $0xa0] sm:$0xff] }
   0x6   :  { %733 = vmatmul.mubr.msk.f32.vlgmr.msra.gmra.mxu1 %vm49_vm1, %v41_v7 }
   0x7   :  { %735 = vmatprep.mubr.msk.f32.mxu1 %vm49_vm1, %v42_v8 }
   0x8   :  { %712 = vmatmul.mubr.msk.f32.gmra.mxu0 %vm49_vm1, %v27_v4 }
   0x9   :  { %714 = vmatprep.mubr.msk.f32.mxu0 %vm49_vm1, %v28_v6 }
   0xa   :  { %11 = vsyncpa [#allocation3], 0  ;;  %v30_v12 = vld [vmem:[%s1050_s1 + $0x30] sm:$0xff]  ;;  %736 = vmatmul.mubr.msk.f32.gmra.mxu1 %vm49_vm1, %v43_v9  ;;  %v45_v13 = vld [vmem:[%s1050_s1 + $0xa8] sm:$0xff]  ;;  %vm435_vm2 = vcmask 523264   ;;  %v871_v28 = vmov 0  }
   0xb   :  { %738 = vmatprep.mubr.msk.f32.mxu1 %vm49_vm1, %v44_v11  ;;  %v31_v14 = vld [vmem:[%s1050_s1 + $0x38] sm:$0xff]  ;;  %v46_v15 = vld [vmem:[%s1050_s1 + $0xb0] sm:$0xff]  ;;  %v32_v16 = vld [vmem:[%s1050_s1 + $0x40] sm:$0xff]  ;;  %783 = vset.pattern.permute.xlu0 %v871_v28  ;;  %vm873_vm3 = vmmov 0   ;;  %vm544_vm4 = vcmask 261120   ;;  %s874_s12 = smov [#allocation2]  }
   0xc   :  { %715 = vmatmul.mubr.msk.f32.gmra.mxu0 %vm49_vm1, %v29_v10  ;;  %v47_v17 = vld [vmem:[%s1050_s1 + $0xb8] sm:$0xff]  ;;  %v33_v18 = vld [vmem:[%s1050_s1 + $0x48] sm:$0xff]  ;;  %v34_v19 = vld [vmem:[%s1050_s1 + $0x50] sm:$0xff]  ;;  %784 = vset.pattern.permute.xlu1 %v871_v28  ;;  %s626_s13 = sshll.u32 %s874_s12, 4  ;;  %vm618_vm5 = vcmask 58368   ;;  %s627_s13 = int_to_ptr.vmem [resolvable:$true] %s626_s13 }
   0xd   :  { %717 = vmatprep.mubr.msk.f32.mxu0 %vm49_vm1, %v30_v12  ;;  %v35_v20 = vld [vmem:[%s1050_s1 + $0x58] sm:$0xff]  ;;  %v36_v21 = vld [vmem:[%s1050_s1 + $0x60] sm:$0xff]  ;;  %v37_v22 = vld [vmem:[%s1050_s1 + $0x68] sm:$0xff]  ;;  %s849_s14 = scalar_lea.vmem %s627_s13, 32  ;;  %p854_p1 = scmp.lt.s32.totalorder %s627_s13, %s627_s13 }
   0xe   :  { %739 = vmatmul.mubr.msk.f32.gmra.mxu1 %vm49_vm1, %v45_v13  ;;  %v38_v23 = vld [vmem:[%s1050_s1 + $0x70] sm:$0xff]  ;;  %v39_v24 = vld [vmem:[%s1050_s1 + $0x78] sm:$0xff]  ;;  %v407_v25 = vld [vmem:[%s1051_s2] sm:$0xff]  ;;  %p850_p0 = scmp.ne.s32.totalorder %s627_s13, %s849_s14  ;;  %p855_p2 = scmp.lt.s32.totalorder %s849_s14, %s849_s14 }
   0xf   :  { %741 = vmatprep.mubr.msk.f32.mxu1 %vm49_vm1, %v46_v15  ;;  %v414_v26 = vld [vmem:[%s1052_s3 + $0x18] sm:$0xff]  ;;  %v412_v27 = vld [vmem:[%s1052_s3 + $0x8] sm:$0xff]  ;;  %v413_v29 = vld [vmem:[%s1052_s3 + $0x10] sm:$0xff] }
  0x10   :  { %718 = vmatmul.mubr.msk.f32.gmra.mxu0 %vm49_vm1, %v31_v14  ;;  %432 = vperm.xlu0 %783, %v414_v26   ;;  %v411_v30 = vld [vmem:[%s1052_s3] sm:$0xff]  ;;  %p856_p3 = por %p855_p2, %p854_p1 }
  0x11   :  { %720 = vmatprep.mubr.msk.f32.mxu0 %vm49_vm1, %v32_v16  ;;  %422 = vperm.xlu1 %784, %v412_v27   ;;  %v538_v31 = vld [vmem:[%s1054_s5] sm:$0x3] }
  0x12   :  { %742 = vmatmul.mubr.msk.f32.gmra.mxu1 %vm49_vm1, %v47_v17  ;;  %p857_p4 = pnand %p856_p3, %p850_p0 }
  0x13   :  { %760 = vmatprep.mubr.msk.f32.mxu1 %vm435_vm2, %v407_v25 }
  0x14   :  { %721 = vmatmul.mubr.msk.f32.gmra.mxu0 %vm49_vm1, %v33_v18  ;;  %427 = vperm.xlu0 %783, %v413_v29  }
  0x15   :  { %723 = vmatprep.mubr.msk.f32.mxu0 %vm49_vm1, %v34_v19  ;;  %417 = vperm.xlu1 %784, %v411_v30  }
  0x18   :  { %724 = vmatmul.mubr.msk.f32.gmra.mxu0 %vm49_vm1, %v35_v20  ;;  %541 = vperm.xlu0 %783, %v538_v31  }
  0x19   :  { %726 = vmatprep.mubr.msk.f32.mxu0 %vm49_vm1, %v36_v21 }
  0x1c   :  { %727 = vmatmul.mubr.msk.f32.gmra.mxu0 %vm49_vm1, %v37_v22 }
  0x1d   :  { %729 = vmatprep.mubr.msk.f32.mxu0 %vm49_vm1, %v38_v23 }
  0x20   :  { %730 = vmatmul.mubr.msk.f32.gmra.mxu0 %vm49_vm1, %v39_v24 }
  0xc4   :  { %v710_v32 = vpop.f32.mrf.mxu0 }
  0xc5   :  { %v312_v43 = vmul.f32 0.5, %v710_v32 }
  0xc6   :  { %v192_v33 = vpop.f32.mrf.mxu0  ;;  %v734_v35 = vpop.f32.mrf.mxu1 }
  0xc7   :  { %785 = vtanh.f32 %v312_v43  ;;  %v311_v51 = vmul.f32 0.5, %v192_v33  ;;  %v352_v9 = vmul.f32 0.5, %v734_v35 }
  0xc8   :  { %v713_v34 = vpop.f32.mrf.mxu0  ;;  %v1028_v38 = vpop.f32.mrf.mxu1 }
  0xc9   :  { %v314_v54 = vmul.f32 0.5, %v713_v34 }
  0xca   :  { %v202_v36 = vpop.f32.mrf.mxu0  ;;  %v737_v41 = vpop.f32.mrf.mxu1 }
  0xcb   :  { %v313_v56 = vmul.f32 0.5, %v202_v36  ;;  %v354_v12 = vmul.f32 0.5, %v737_v41 }
  0xcc   :  { %v716_v37 = vpop.f32.mrf.mxu0  ;;  %v282_v46 = vpop.f32.mrf.mxu1 }
  0xcd   :  { %v316_v44 = vmul.f32 0.5, %v716_v37  ;;  %v353_v20 = vmul.f32 0.5, %v282_v46  ;;  %v351_v37 = vmul.f32 0.5, %v1028_v38 }
  0xce   :  { %v212_v39 = vpop.f32.mrf.mxu0  ;;  %v740_v53 = vpop.f32.mrf.mxu1 }
  0xcf   :  { %v315_v48 = vmul.f32 0.5, %v212_v39  ;;  %787 = vtanh.f32 %v316_v44  ;;  %v356_v4 = vmul.f32 0.5, %v740_v53 }
  0xd0   :  { %v719_v40 = vpop.f32.mrf.mxu0  ;;  %v292_v58 = vpop.f32.mrf.mxu1 }
  0xd1   :  { %v318_v47 = vmul.f32 0.5, %v719_v40  ;;  %v355_v14 = vmul.f32 0.5, %v292_v58 }
  0xd2   :  { %v222_v42 = vpop.f32.mrf.mxu0  ;;  %v743_v61 = vpop.f32.mrf.mxu1 }
  0xd3   :  { %v317_v50 = vmul.f32 0.5, %v222_v42  ;;  %789 = vtanh.f32 %v318_v47  ;;  %v358_v63 = vmul.f32 0.5, %v743_v61 }
  0xd4   :  { %v722_v45 = vpop.f32.mrf.mxu0  ;;  %791 = vtanh.f32 %v315_v48  ;;  %v786_v0 = vpop.eup %785 }
  0xd5   :  { %793 = vtanh.f32 %v317_v50  ;;  %v302_v1 = vpop.f32.mrf.mxu1  ;;  %v328_v32 = vmul.f32 0.5, %v786_v0 }
  0xd6   :  { %v232_v49 = vpop.f32.mrf.mxu0  ;;  %795 = vtanh.f32 %v311_v51  ;;  %v357_v6 = vmul.f32 0.5, %v302_v1 }
  0xd7   :  { %797 = vtanh.f32 %v314_v54  ;;  %v336_v44 = vadd.f32 0.5, %v328_v32 }
  0xd8   :  { %v725_v52 = vpop.f32.mrf.mxu0 }
  0xda   :  { %v242_v55 = vpop.f32.mrf.mxu0 }
  0xdc   :  { %v728_v57 = vpop.f32.mrf.mxu0  ;;  %v788_v2 = vpop.eup %787 }
  0xdd   :  { %799 = vtanh.f32 %v728_v57  ;;  %v332_v8 = vmul.f32 0.5, %v788_v2 }
  0xde   :  { %v252_v59 = vpop.f32.mrf.mxu0  ;;  %801 = vtanh.f32 %v313_v56 }
  0xdf   :  { %803 = vtanh.f32 %v252_v59  ;;  %v340_v19 = vadd.f32 0.5, %v332_v8 }
  0xe0   :  { %v731_v60 = vpop.f32.mrf.mxu0  ;;  %v790_v3 = vpop.eup %789 }
  0xe1   :  { %805 = vtanh.f32 %v731_v60  ;;  %v792_v5 = vpop.eup %791  ;;  %v334_v11 = vmul.f32 0.5, %v790_v3 }
  0xe2   :  { %807 = vtanh.f32 %v725_v52  ;;  %v262_v62 = vpop.f32.mrf.mxu0  ;;  %v794_v7 = vpop.eup %793  ;;  %v331_v16 = vmul.f32 0.5, %v792_v5 }
  0xe3   :  { %809 = vtanh.f32 %v262_v62  ;;  %v796_v10 = vpop.eup %795  ;;  %v333_v17 = vmul.f32 0.5, %v794_v7  ;;  %v342_v23 = vadd.f32 0.5, %v334_v11 }
  0xe4   :  { %811 = vtanh.f32 %v242_v55  ;;  %v798_v13 = vpop.eup %797  ;;  %v339_v28 = vadd.f32 0.5, %v331_v16  ;;  %v327_v40 = vmul.f32 0.5, %v796_v10 }
  0xe5   :  { %813 = vtanh.f32 %v722_v45  ;;  %v330_v22 = vmul.f32 0.5, %v798_v13  ;;  %v341_v29 = vadd.f32 0.5, %v333_v17 }
  0xe6   :  { %815 = vtanh.f32 %v358_v63  ;;  %v335_v48 = vadd.f32 0.5, %v327_v40 }
  0xe7   :  { %817 = vtanh.f32 %v232_v49  ;;  %v338_v33 = vadd.f32 0.5, %v330_v22 }
  0xe8   :  { %819 = vtanh.f32 %v356_v4 }
  0xe9   :  { %821 = vtanh.f32 %v357_v6 }
  0xea   :  { %v800_v15 = vpop.eup %799  ;;  %823 = vtanh.f32 %v352_v9 }
  0xeb   :  { %v802_v18 = vpop.eup %801  ;;  %825 = vtanh.f32 %v354_v12  ;;  %v388_v25 = vmul.f32 %v800_v15, %v340_v19 }
  0xec   :  { %v804_v21 = vpop.eup %803  ;;  %827 = vtanh.f32 %v355_v14  ;;  %v329_v27 = vmul.f32 0.5, %v802_v18 }
  0xed   :  { %829 = vtanh.f32 %v353_v20  ;;  %v387_v34 = vmul.f32 %v804_v21, %v339_v28  ;;  %v433_v28 = vpop.permute.xlu0 %432 }
  0xee   :  { %v806_v24 = vpop.eup %805  ;;  %v337_v41 = vadd.f32 0.5, %v329_v27  ;;  %v872_v27 = vmov 0.0  }
  0xef   :  { %v808_v26 = vpop.eup %807  ;;  %v390_v30 = vmul.f32 %v806_v24, %v342_v23  ;;  %v408_v24 = vld [vmem:[%s1051_s2 + $0x8] sm:$0xff] }
  0xf0   :  { %v810_v31 = vpop.eup %809  ;;  %v386_v42 = vmul.f32 %v808_v26, %v338_v33  ;;  %v410_v26 = vld [vmem:[%s1051_s2 + $0x18] sm:$0xff] }
  0xf1   :  { %831 = vtanh.f32 %v390_v30  ;;  %v389_v35 = vmul.f32 %v810_v31, %v341_v29  ;;  %v812_v36 = vpop.eup %811  ;;  %v423_v29 = vpop.permute.xlu1 %422 }
  0xf2   :  { %833 = vtanh.f32 %v388_v25  ;;  %v814_v39 = vpop.eup %813  ;;  %v385_v45 = vmul.f32 %v812_v36, %v337_v41  ;;  %v409_v25 = vld [vmem:[%s1051_s2 + $0x10] sm:$0xff]  ;;  %v428_v33 = vpop.permute.xlu0 %427 }
  0xf3   :  { %835 = vtanh.f32 %v389_v35  ;;  %v816_v43 = vpop.eup %815  ;;  %v384_v49 = vmul.f32 %v814_v39, %v336_v44 }
  0xf4   :  { %837 = vtanh.f32 %v387_v34  ;;  %v818_v46 = vpop.eup %817  ;;  %v374_v50 = vmul.f32 0.5, %v816_v43 }
  0xf5   :  { %839 = vtanh.f32 %v351_v37  ;;  %v820_v47 = vpop.eup %819  ;;  %v383_v53 = vmul.f32 %v818_v46, %v335_v48  ;;  %v418_v35 = vpop.permute.xlu1 %417 }
  0xf6   :  { %841 = vtanh.f32 %v386_v42  ;;  %v822_v51 = vpop.eup %821  ;;  %v372_v55 = vmul.f32 0.5, %v820_v47  ;;  %v382_v56 = vadd.f32 0.5, %v374_v50  ;;  %v542_v46 = vpop.permute.xlu0 %541 }
  0xf7   :  { %v824_v52 = vpop.eup %823  ;;  %843 = vtanh.f32 %v385_v45  ;;  %v373_v57 = vmul.f32 0.5, %v822_v51  ;;  %v537_v45 = vld [vmem:[%s1053_s4] sm:$0x3] }
  0xf8   :  { %v826_v38 = vpop.eup %825  ;;  %845 = vtanh.f32 %v384_v49  ;;  %v380_v62 = vadd.f32 0.5, %v372_v55  ;;  %v368_v5 = vmul.f32 0.5, %v824_v52 }
  0xf9   :  { %v828_v54 = vpop.eup %827  ;;  %847 = vtanh.f32 %v383_v53  ;;  %v370_v60 = vmul.f32 0.5, %v826_v38  ;;  %v381_v0 = vadd.f32 0.5, %v373_v57 }
  0xfa   :  { %v830_v58 = vpop.eup %829  ;;  %v371_v63 = vmul.f32 0.5, %v828_v54  ;;  %v376_v14 = vadd.f32 0.5, %v368_v5 }
  0xfb   :  { %v378_v7 = vadd.f32 0.5, %v370_v60  ;;  %v369_v8 = vmul.f32 0.5, %v830_v58 }
  0xfc   :  { %v379_v9 = vadd.f32 0.5, %v371_v63 }
  0xfd   :  { %v377_v16 = vadd.f32 0.5, %v369_v8 }
  0xfe   :  { %v832_v59 = vpop.eup %831 }
  0xff   :  { %v834_v61 = vpop.eup %833  ;;  %v406_v1 = vmul.f32 %v832_v59, %v382_v56 }
 0x100   :  { %v836_v2 = vpop.eup %835  ;;  %v404_v10 = vmul.f32 %v834_v61, %v380_v62 }
 0x101   :  { %744 = vmatprep.subr.mxu1 %v406_v1  ;;  %v405_v3 = vmul.f32 %v836_v2, %v381_v0  ;;  %v838_v4 = vpop.eup %837 }
 0x102   :  { %745 = vmatpush3.msra.mxu1 %v406_v1  ;;  %v840_v6 = vpop.eup %839  ;;  %v403_v12 = vmul.f32 %v838_v4, %v379_v9 }
 0x103   :  { %746 = vmatprep.subr.mxu1 %v405_v3  ;;  %v842_v11 = vpop.eup %841  ;;  %v367_v15 = vmul.f32 0.5, %v840_v6 }
 0x104   :  { %747 = vmatpush3.msra.mxu1 %v405_v3  ;;  %v844_v13 = vpop.eup %843  ;;  %v402_v17 = vmul.f32 %v842_v11, %v378_v7 }
 0x105   :  { %748 = vmatprep.subr.mxu1 %v404_v10  ;;  %v846_v18 = vpop.eup %845  ;;  %v401_v19 = vmul.f32 %v844_v13, %v377_v16  ;;  %v375_v21 = vadd.f32 0.5, %v367_v15 }
 0x106   :  { %749 = vmatpush3.msra.mxu1 %v404_v10  ;;  %v848_v20 = vpop.eup %847  ;;  %v400_v22 = vmul.f32 %v846_v18, %v376_v14 }
 0x107   :  { %750 = vmatprep.subr.mxu1 %v403_v12  ;;  %v399_v23 = vmul.f32 %v848_v20, %v375_v21 }
 0x108   :  { %751 = vmatpush3.msra.mxu1 %v403_v12 }
 0x109   :  { %752 = vmatprep.subr.mxu1 %v402_v17 }
 0x10a   :  { %753 = vmatpush3.msra.mxu1 %v402_v17 }
 0x10b   :  { %754 = vmatprep.subr.mxu1 %v401_v19 }
 0x10c   :  { %755 = vmatpush3.msra.mxu1 %v401_v19 }
 0x10d   :  { %756 = vmatprep.subr.mxu1 %v400_v22 }
 0x10e   :  { %757 = vmatpush3.msra.mxu1 %v400_v22 }
 0x10f   :  { %758 = vmatprep.subr.mxu1 %v399_v23 }
 0x110   :  { %759 = vmatpush3.msra.mxu1 %v399_v23 }
 0x111   :  { %761 = vmatmul.mubr.msk.f32.vlgmr.msra.gmra.mxu1 %vm435_vm2, %v408_v24  ;;  %766 = vmatprep.subr.mxu1 %v872_v27 }
 0x112   :  { %763 = vmatprep.mubr.msk.f32.mxu1 %vm435_vm2, %v409_v25 }
 0x115   :  { %764 = vmatmul.mubr.msk.f32.gmra.mxu1 %vm435_vm2, %v410_v26 }
 0x116   :  { %774 = vmatprep.mubr.msk.f32.mxu1 %vm873_vm3, %v872_v27 }
 0x1d1   :  { %v762_v30 = vpop.f32.mrf.mxu1 }
 0x1d2   :  { %v520_v37 = vadd.f32 %v762_v30, %v423_v29 }
 0x1d3   :  { %v514_v31 = vpop.f32.mrf.mxu1 }
 0x1d4   :  { %v515_v41 = vadd.f32 %v514_v31, %v418_v35  ;;  %v534_v43 = vmax.f32 %v520_v37, 0.0 }
 0x1d5   :  { %v765_v32 = vpop.f32.mrf.mxu1 }
 0x1d6   :  { %v530_v34 = vadd.f32 %v765_v32, %v433_v28  ;;  %v533_v44 = vmax.f32 %v515_v41, 0.0 }
 0x1d7   :  { %v524_v36 = vpop.f32.mrf.mxu1 }
 0x1d8   :  { %v536_v39 = vmax.f32 %v530_v34, 0.0  ;;  %v525_v40 = vadd.f32 %v524_v36, %v428_v33 }
 0x1da   :  { %v535_v42 = vmax.f32 %v525_v40, 0.0  ;;  %767 = vmatpush3.msra.mxu1 %v536_v39 }
 0x1db   :  { %768 = vmatprep.subr.mxu1 %v872_v27 }
 0x1dc   :  { %769 = vmatpush3.msra.mxu1 %v535_v42 }
 0x1dd   :  { %770 = vmatprep.subr.mxu1 %v872_v27 }
 0x1de   :  { %771 = vmatpush3.msra.mxu1 %v534_v43 }
 0x1df   :  { %772 = vmatprep.subr.mxu1 %v872_v27 }
 0x1e0   :  { %773 = vmatpush3.msra.mxu1 %v533_v44 }
 0x1e1   :  { %775 = vmatmul.mubr.msk.f32.vlgmr.msra.gmra.mxu1 %vm544_vm4, %v537_v45 }
 0x2a1   :  { %v614_v47 = vpop.f32.mrf.mxu1 }
 0x2a2   :  { %v615_v48 = vadd.f32 %v614_v47, %v542_v46 }
 0x2a3   :  { %v776_v49 = vpop.f32.mrf.mxu1 }
 0x2a4   :  { %619 = vst.msk [vmem:[#allocation2] sm:$0x3] %vm618_vm5, %v615_v48 }
 0x2a5   :  { %860 = shalt.err (!%p857_p4)
}
 0x2a6   :  { %629 = dma.vmem_to_hbm [thread:$0]  %s627_s13, 32, %s1055_s6, [#allocation3]  }
 0x2a7   :  { %869 = dma.done.wait [#allocation3], 32  }
 0x2a8   :  { %870 = vsyncadd [#allocation3], 4294967264 }
 0x2a9   :  { %633 = vsyncpa [#allocation3], 1 }

</bundles_post_ra>
